<compile_context>
chip_gen: v6e
topology: v6e:2x2x1
jax: 0.10.0
libtpu: 0.0.40
codegen_flags: <defaults>
</compile_context>

<pallas_src>
import jax
import jax.numpy as jnp
from jax.experimental import pallas as pl
from jax.experimental.pallas import tpu as pltpu


N_TRACK = 10
N_WAYPOINTS = 3
HIDDEN_DIM = 128
HALF_INPUT_DIM = N_TRACK * 2        # 20 (per side)
INPUT_DIM = HALF_INPUT_DIM * 2      # 40
OUTPUT_DIM = N_WAYPOINTS * 2        # 6
PADDED_OUT = 128                    # lane-dense output width

MAX_TILE_B = 2048                   # rows per grid step (fits scoped VMEM on all gens)


def _round_up(x, m):
    return ((x + m - 1) // m) * m


def _cdiv(a, b):
    return (a + b - 1) // b


def _tensorcores_per_chip():
    """Best-effort detection of v7x (2 TensorCores per chip)."""
    try:
        kind = jax.devices()[0].device_kind.lower()
    except Exception:
        return 1
    return 2 if "v7" in kind else 1


def _mlp_kernel(left_ref, right_ref,
                w1a_ref, w1b_ref, b1_ref,
                w2_ref, b2_ref,
                w3_ref, b3_ref,
                w4_ref, b4_ref,
                o_ref):
    # In-kernel bf16 cast (VPU, hidden under MXU work) -> f32 inputs from HBM.
    left = left_ref[...].astype(jnp.bfloat16)
    right = right_ref[...].astype(jnp.bfloat16)

    # Layer 1: (tb, 20) @ (20, 128) twice == (tb, 40) @ (40, 128) with the
    # torch.cat([left, right], dim=1) ordering; f32 accumulation on the MXU.
    h = (jnp.dot(left, w1a_ref[...], preferred_element_type=jnp.float32)
         + jnp.dot(right, w1b_ref[...], preferred_element_type=jnp.float32))
    h = jnp.maximum(h + b1_ref[...], 0.0)

    # Layer 2: (tb, 128) @ (128, 128), bf16 MXU inputs, f32 acc, f32 ReLU.
    h = jnp.dot(h.astype(jnp.bfloat16), w2_ref[...],
                preferred_element_type=jnp.float32)
    h = jnp.maximum(h + b2_ref[...], 0.0)

    # Layer 3
    h = jnp.dot(h.astype(jnp.bfloat16), w3_ref[...],
                preferred_element_type=jnp.float32)
    h = jnp.maximum(h + b3_ref[...], 0.0)

    # Layer 4: (tb, 128) @ (128, 128) -- w4/b4 zero-padded to 128 cols so the
    # store is lane-dense (cols 6..127 are exactly zero and sliced off later).
    o_ref[...] = (jnp.dot(h.astype(jnp.bfloat16), w4_ref[...],
                          preferred_element_type=jnp.float32)
                  + b4_ref[...]).astype(o_ref.dtype)


def init_params(key):
    """Deterministic parameter init (Kaiming-uniform-ish, like nn.Linear default)."""
    dims = [(INPUT_DIM, HIDDEN_DIM),
            (HIDDEN_DIM, HIDDEN_DIM),
            (HIDDEN_DIM, HIDDEN_DIM),
            (HIDDEN_DIM, OUTPUT_DIM)]
    params = []
    for fan_in, fan_out in dims:
        kw, kb, key = jax.random.split(key, 3)
        bound = 1.0 / jnp.sqrt(fan_in)
        w = jax.random.uniform(kw, (fan_in, fan_out), jnp.float32, -bound, bound)
        b = jax.random.uniform(kb, (1, fan_out), jnp.float32, -bound, bound)
        params.append((w, b))
    return params


def mlp_planner_forward(track_left, track_right, params, max_tile_b=MAX_TILE_B):
    """track_left, track_right: (b, n_track, 2) -> waypoints (b, n_waypoints, 2)."""
    b = track_left.shape[0]

    # Flatten each side (metadata-only reshape); keep f32 -- the bf16 cast
    # happens inside the kernel so the wrapper does no extra HBM pass.
    left = track_left.reshape(b, HALF_INPUT_DIM).astype(jnp.float32)
    right = track_right.reshape(b, HALF_INPUT_DIM).astype(jnp.float32)

    (w1, b1), (w2, b2), (w3, b3), (w4, b4) = params
    w1a = w1[:HALF_INPUT_DIM].astype(jnp.bfloat16)   # (20, 128) -> multiplies left
    w1b = w1[HALF_INPUT_DIM:].astype(jnp.bfloat16)   # (20, 128) -> multiplies right
    w2b = w2.astype(jnp.bfloat16)
    w3b = w3.astype(jnp.bfloat16)
    # Lane-dense final layer: zero-pad to 128 output columns (free on the MXU).
    w4p = jnp.pad(w4.astype(jnp.bfloat16), ((0, 0), (0, PADDED_OUT - OUTPUT_DIM)))
    b4p = jnp.pad(b4, ((0, 0), (0, PADDED_OUT - OUTPUT_DIM)))
    # Biases stay f32 (VPU add/ReLU in f32, safe on v5e).

    # Tiling: bound per-step padding to < 8 rows.  On v7x force >= 2 even
    # steps so the "parallel" batch axis is sharded across both TensorCores.
    min_steps = 2 if (_tensorcores_per_chip() >= 2 and b >= 16) else 1
    n_steps = max(min_steps, _cdiv(b, max_tile_b))
    tile_b = _round_up(_cdiv(b, n_steps), 8)
    b_pad = n_steps * tile_b

    if b_pad != b:
        pad = ((0, b_pad - b), (0, 0))
        left = jnp.pad(left, pad)
        right = jnp.pad(right, pad)

    grid = (n_steps,)

    def batched(feat):
        return pl.BlockSpec((tile_b, feat), lambda i: (i, 0))

    def resident(arr):
        # Same block for every grid step -> weights/biases stay hot in VMEM.
        return pl.BlockSpec(arr.shape, lambda i: (0, 0))

    out = pl.pallas_call(
        _mlp_kernel,
        out_shape=jax.ShapeDtypeStruct((b_pad, PADDED_OUT), jnp.float32),
        grid=grid,
        in_specs=[batched(HALF_INPUT_DIM), batched(HALF_INPUT_DIM),
                  resident(w1a), resident(w1b), resident(b1),
                  resident(w2b), resident(b2),
                  resident(w3b), resident(b3),
                  resident(w4p), resident(b4p)],
        out_specs=batched(PADDED_OUT),
        compiler_params=pltpu.CompilerParams(
            dimension_semantics=("parallel",)),
    )(left, right, w1a, w1b, b1, w2b, b2, w3b, b3, w4p, b4p)

    return out[:b, :OUTPUT_DIM].reshape(b, N_WAYPOINTS, 2)


def _reference_forward_bf16(track_left, track_right, params):
    """Plain-JAX reference mirroring the kernel's bf16-in / f32-accumulate math."""
    b = track_left.shape[0]
    x = jnp.concatenate(
        [track_left.reshape(b, -1), track_right.reshape(b, -1)], axis=1)
    (w1, b1), (w2, b2), (w3, b3), (w4, b4) = params

    def dot(a, w):
        return jnp.dot(a.astype(jnp.bfloat16), w.astype(jnp.bfloat16),
                       preferred_element_type=jnp.float32)

    h = jnp.maximum(dot(x, w1) + b1, 0.0)
    h = jnp.maximum(dot(h, w2) + b2, 0.0)
    h = jnp.maximum(dot(h, w3) + b3, 0.0)
    return (dot(h, w4) + b4).reshape(b, N_WAYPOINTS, 2)


def _reference_forward_f32(track_left, track_right, params):
    """Full-precision reference (module semantics), loose-tolerance sanity check."""
    b = track_left.shape[0]
    x = jnp.concatenate(
        [track_left.reshape(b, -1), track_right.reshape(b, -1)], axis=1)
    (w1, b1), (w2, b2), (w3, b3), (w4, b4) = params
    h = jnp.maximum(x @ w1 + b1, 0.0)
    h = jnp.maximum(h @ w2 + b2, 0.0)
    h = jnp.maximum(h @ w3 + b3, 0.0)
    return (h @ w4 + b4).reshape(b, N_WAYPOINTS, 2)


if __name__ == "__main__":
    key = jax.random.PRNGKey(0)
    kp, kl, kr = jax.random.split(key, 3)

    params = init_params(kp)

    # Small case (batch=2): single grid step, tile rounded up to 8, <8 pad rows.
    batch = 2
    track_left = jax.random.normal(kl, (batch, N_TRACK, 2), jnp.float32)
    track_right = jax.random.normal(kr, (batch, N_TRACK, 2), jnp.float32)

    waypoints = mlp_planner_forward(track_left, track_right, params)
    waypoints = jax.block_until_ready(waypoints)

    assert waypoints.shape == (batch, N_WAYPOINTS, 2)
    ref_bf16 = _reference_forward_bf16(track_left, track_right, params)
    ref_f32 = _reference_forward_f32(track_left, track_right, params)
    assert jnp.allclose(waypoints, ref_bf16, atol=1e-3, rtol=1e-3)
    assert jnp.allclose(waypoints, ref_f32, atol=5e-2, rtol=5e-2)

    # Larger case: exercises the new tiling policy (no pad on 1-TC chips,
    # even 2-way split on v7x), resident weights, lane-dense output slice.
    batch2 = 600
    kl2, kr2 = jax.random.split(jax.random.PRNGKey(1), 2)
    tl2 = jax.random.normal(kl2, (batch2, N_TRACK, 2), jnp.float32)
    tr2 = jax.random.normal(kr2, (batch2, N_TRACK, 2), jnp.float32)
    wp2 = jax.block_until_ready(mlp_planner_forward(tl2, tr2, params))
    assert wp2.shape == (batch2, N_WAYPOINTS, 2)
    assert jnp.allclose(wp2, _reference_forward_bf16(tl2, tr2, params),
                        atol=1e-3, rtol=1e-3)

    print("KERNEL_OK")
</pallas_src>

<mosaic_0001>
module attributes {stable_mosaic.version = 11 : i64} {
  func.func @_mlp_kernel(%arg0: i32, %arg1: memref<8x20xf32, #tpu.memory_space<vmem>>, %arg2: memref<8x20xf32, #tpu.memory_space<vmem>>, %arg3: memref<20x128xbf16, #tpu.memory_space<vmem>>, %arg4: memref<20x128xbf16, #tpu.memory_space<vmem>>, %arg5: memref<1x128xf32, #tpu.memory_space<vmem>>, %arg6: memref<128x128xbf16, #tpu.memory_space<vmem>>, %arg7: memref<1x128xf32, #tpu.memory_space<vmem>>, %arg8: memref<128x128xbf16, #tpu.memory_space<vmem>>, %arg9: memref<1x128xf32, #tpu.memory_space<vmem>>, %arg10: memref<128x128xbf16, #tpu.memory_space<vmem>>, %arg11: memref<1x128xf32, #tpu.memory_space<vmem>>, %arg12: memref<8x128xf32, #tpu.memory_space<vmem>>) attributes {dimension_semantics = [#tpu.dimension_semantics<parallel>], iteration_bounds = array<i64: 1>, scalar_prefetch = 0 : i64, scratch_operands = 0 : i64, tpu.core_type = #tpu.core_type<tc>, window_params = [{transform_indices = @transform_0, window_bounds = array<i64: 8, 20>}, {transform_indices = @transform_1, window_bounds = array<i64: 8, 20>}, {pipeline_mode = #tpu.pipeline_mode<synchronous>, transform_indices = @transform_2, window_bounds = array<i64: 20, 128>}, {pipeline_mode = #tpu.pipeline_mode<synchronous>, transform_indices = @transform_3, window_bounds = array<i64: 20, 128>}, {pipeline_mode = #tpu.pipeline_mode<synchronous>, transform_indices = @transform_4, window_bounds = array<i64: 1, 128>}, {pipeline_mode = #tpu.pipeline_mode<synchronous>, transform_indices = @transform_5, window_bounds = array<i64: 128, 128>}, {pipeline_mode = #tpu.pipeline_mode<synchronous>, transform_indices = @transform_6, window_bounds = array<i64: 1, 128>}, {pipeline_mode = #tpu.pipeline_mode<synchronous>, transform_indices = @transform_7, window_bounds = array<i64: 128, 128>}, {pipeline_mode = #tpu.pipeline_mode<synchronous>, transform_indices = @transform_8, window_bounds = array<i64: 1, 128>}, {pipeline_mode = #tpu.pipeline_mode<synchronous>, transform_indices = @transform_9, window_bounds = array<i64: 128, 128>}, {pipeline_mode = #tpu.pipeline_mode<synchronous>, transform_indices = @transform_10, window_bounds = array<i64: 1, 128>}, {transform_indices = @transform_11, window_bounds = array<i64: 8, 128>}]} {
    %c0 = arith.constant 0 : index
    %c0_0 = arith.constant 0 : index
    %0 = vector.load %arg1[%c0, %c0_0] : memref<8x20xf32, #tpu.memory_space<vmem>>, vector<8x20xf32>
    %1 = arith.truncf %0 : vector<8x20xf32> to vector<8x20xbf16>
    %c0_1 = arith.constant 0 : index
    %c0_2 = arith.constant 0 : index
    %2 = vector.load %arg2[%c0_1, %c0_2] : memref<8x20xf32, #tpu.memory_space<vmem>>, vector<8x20xf32>
    %3 = arith.truncf %2 : vector<8x20xf32> to vector<8x20xbf16>
    %c0_3 = arith.constant 0 : index
    %c0_4 = arith.constant 0 : index
    %4 = vector.load %arg3[%c0_3, %c0_4] : memref<20x128xbf16, #tpu.memory_space<vmem>>, vector<20x128xbf16>
    %cst = arith.constant dense<0.000000e+00> : vector<8x128xf32>
    %5 = tpu.matmul %1, %4, %cst {dimension_numbers = #tpu.dot_dimension_numbers<[1], [0], [0], [1], [0, 0, 1, 1], [], []>} : vector<8x20xbf16>, vector<20x128xbf16>, vector<8x128xf32> -> vector<8x128xf32>
    %c0_5 = arith.constant 0 : index
    %c0_6 = arith.constant 0 : index
    %6 = vector.load %arg4[%c0_5, %c0_6] : memref<20x128xbf16, #tpu.memory_space<vmem>>, vector<20x128xbf16>
    %cst_7 = arith.constant dense<0.000000e+00> : vector<8x128xf32>
    %7 = tpu.matmul %3, %6, %cst_7 {dimension_numbers = #tpu.dot_dimension_numbers<[1], [0], [0], [1], [0, 0, 1, 1], [], []>} : vector<8x20xbf16>, vector<20x128xbf16>, vector<8x128xf32> -> vector<8x128xf32>
    %8 = arith.addf %5, %7 : vector<8x128xf32>
    %c0_8 = arith.constant 0 : index
    %c0_9 = arith.constant 0 : index
    %9 = vector.load %arg5[%c0_8, %c0_9] : memref<1x128xf32, #tpu.memory_space<vmem>>, vector<1x128xf32>
    %10 = vector.broadcast %9 : vector<1x128xf32> to vector<8x128xf32>
    %11 = arith.addf %8, %10 : vector<8x128xf32>
    %cst_10 = arith.constant 0.000000e+00 : f32
    %12 = vector.broadcast %cst_10 : f32 to vector<8x128xf32>
    %13 = arith.maximumf %11, %12 : vector<8x128xf32>
    %14 = arith.truncf %13 : vector<8x128xf32> to vector<8x128xbf16>
    %c0_11 = arith.constant 0 : index
    %c0_12 = arith.constant 0 : index
    %15 = vector.load %arg6[%c0_11, %c0_12] : memref<128x128xbf16, #tpu.memory_space<vmem>>, vector<128x128xbf16>
    %cst_13 = arith.constant dense<0.000000e+00> : vector<8x128xf32>
    %16 = tpu.matmul %14, %15, %cst_13 {dimension_numbers = #tpu.dot_dimension_numbers<[1], [0], [0], [1], [0, 0, 1, 1], [], []>} : vector<8x128xbf16>, vector<128x128xbf16>, vector<8x128xf32> -> vector<8x128xf32>
    %c0_14 = arith.constant 0 : index
    %c0_15 = arith.constant 0 : index
    %17 = vector.load %arg7[%c0_14, %c0_15] : memref<1x128xf32, #tpu.memory_space<vmem>>, vector<1x128xf32>
    %18 = vector.broadcast %17 : vector<1x128xf32> to vector<8x128xf32>
    %19 = arith.addf %16, %18 : vector<8x128xf32>
    %cst_16 = arith.constant 0.000000e+00 : f32
    %20 = vector.broadcast %cst_16 : f32 to vector<8x128xf32>
    %21 = arith.maximumf %19, %20 : vector<8x128xf32>
    %22 = arith.truncf %21 : vector<8x128xf32> to vector<8x128xbf16>
    %c0_17 = arith.constant 0 : index
    %c0_18 = arith.constant 0 : index
    %23 = vector.load %arg8[%c0_17, %c0_18] : memref<128x128xbf16, #tpu.memory_space<vmem>>, vector<128x128xbf16>
    %cst_19 = arith.constant dense<0.000000e+00> : vector<8x128xf32>
    %24 = tpu.matmul %22, %23, %cst_19 {dimension_numbers = #tpu.dot_dimension_numbers<[1], [0], [0], [1], [0, 0, 1, 1], [], []>} : vector<8x128xbf16>, vector<128x128xbf16>, vector<8x128xf32> -> vector<8x128xf32>
    %c0_20 = arith.constant 0 : index
    %c0_21 = arith.constant 0 : index
    %25 = vector.load %arg9[%c0_20, %c0_21] : memref<1x128xf32, #tpu.memory_space<vmem>>, vector<1x128xf32>
    %26 = vector.broadcast %25 : vector<1x128xf32> to vector<8x128xf32>
    %27 = arith.addf %24, %26 : vector<8x128xf32>
    %cst_22 = arith.constant 0.000000e+00 : f32
    %28 = vector.broadcast %cst_22 : f32 to vector<8x128xf32>
    %29 = arith.maximumf %27, %28 : vector<8x128xf32>
    %30 = arith.truncf %29 : vector<8x128xf32> to vector<8x128xbf16>
    %c0_23 = arith.constant 0 : index
    %c0_24 = arith.constant 0 : index
    %31 = vector.load %arg10[%c0_23, %c0_24] : memref<128x128xbf16, #tpu.memory_space<vmem>>, vector<128x128xbf16>
    %cst_25 = arith.constant dense<0.000000e+00> : vector<8x128xf32>
    %32 = tpu.matmul %30, %31, %cst_25 {dimension_numbers = #tpu.dot_dimension_numbers<[1], [0], [0], [1], [0, 0, 1, 1], [], []>} : vector<8x128xbf16>, vector<128x128xbf16>, vector<8x128xf32> -> vector<8x128xf32>
    %c0_26 = arith.constant 0 : index
    %c0_27 = arith.constant 0 : index
    %33 = vector.load %arg11[%c0_26, %c0_27] : memref<1x128xf32, #tpu.memory_space<vmem>>, vector<1x128xf32>
    %34 = vector.broadcast %33 : vector<1x128xf32> to vector<8x128xf32>
    %35 = arith.addf %32, %34 : vector<8x128xf32>
    %c0_28 = arith.constant 0 : index
    %c0_29 = arith.constant 0 : index
    %36 = vector.load %arg12[%c0_28, %c0_29] : memref<8x128xf32, #tpu.memory_space<vmem>>, vector<8x128xf32>
    tpu.vector_store %arg12[%c0_28, %c0_29], %35 {strides = array<i32>} : memref<8x128xf32, #tpu.memory_space<vmem>>, vector<8x128xf32>,
    return
  }
  func.func @transform_0(%arg0: i32) -> (i32, i32) {
    %c0_i32 = arith.constant 0 : i32
    %c0_i32_0 = arith.constant 0 : i32
    return %arg0, %c0_i32 : i32, i32
  }
  func.func @transform_1(%arg0: i32) -> (i32, i32) {
    %c0_i32 = arith.constant 0 : i32
    %c0_i32_0 = arith.constant 0 : i32
    return %arg0, %c0_i32 : i32, i32
  }
  func.func @transform_2(%arg0: i32) -> (i32, i32) {
    %c0_i32 = arith.constant 0 : i32
    %c0_i32_0 = arith.constant 0 : i32
    %c0_i32_1 = arith.constant 0 : i32
    return %c0_i32, %c0_i32_0 : i32, i32
  }
  func.func @transform_3(%arg0: i32) -> (i32, i32) {
    %c0_i32 = arith.constant 0 : i32
    %c0_i32_0 = arith.constant 0 : i32
    %c0_i32_1 = arith.constant 0 : i32
    return %c0_i32, %c0_i32_0 : i32, i32
  }
  func.func @transform_4(%arg0: i32) -> (i32, i32) {
    %c0_i32 = arith.constant 0 : i32
    %c0_i32_0 = arith.constant 0 : i32
    %c0_i32_1 = arith.constant 0 : i32
    return %c0_i32, %c0_i32_0 : i32, i32
  }
  func.func @transform_5(%arg0: i32) -> (i32, i32) {
    %c0_i32 = arith.constant 0 : i32
    %c0_i32_0 = arith.constant 0 : i32
    %c0_i32_1 = arith.constant 0 : i32
    return %c0_i32, %c0_i32_0 : i32, i32
  }
  func.func @transform_6(%arg0: i32) -> (i32, i32) {
    %c0_i32 = arith.constant 0 : i32
    %c0_i32_0 = arith.constant 0 : i32
    %c0_i32_1 = arith.constant 0 : i32
    return %c0_i32, %c0_i32_0 : i32, i32
  }
  func.func @transform_7(%arg0: i32) -> (i32, i32) {
    %c0_i32 = arith.constant 0 : i32
    %c0_i32_0 = arith.constant 0 : i32
    %c0_i32_1 = arith.constant 0 : i32
    return %c0_i32, %c0_i32_0 : i32, i32
  }
  func.func @transform_8(%arg0: i32) -> (i32, i32) {
    %c0_i32 = arith.constant 0 : i32
    %c0_i32_0 = arith.constant 0 : i32
    %c0_i32_1 = arith.constant 0 : i32
    return %c0_i32, %c0_i32_0 : i32, i32
  }
  func.func @transform_9(%arg0: i32) -> (i32, i32) {
    %c0_i32 = arith.constant 0 : i32
    %c0_i32_0 = arith.constant 0 : i32
    %c0_i32_1 = arith.constant 0 : i32
    return %c0_i32, %c0_i32_0 : i32, i32
  }
  func.func @transform_10(%arg0: i32) -> (i32, i32) {
    %c0_i32 = arith.constant 0 : i32
    %c0_i32_0 = arith.constant 0 : i32
    %c0_i32_1 = arith.constant 0 : i32
    return %c0_i32, %c0_i32_0 : i32, i32
  }
  func.func @transform_11(%arg0: i32) -> (i32, i32) {
    %c0_i32 = arith.constant 0 : i32
    %c0_i32_0 = arith.constant 0 : i32
    return %arg0, %c0_i32 : i32, i32
  }
}

</mosaic_0001>

<bundles_post_ra>
// kernel: tpu_custom_call.1
= control target key start
LH: loop header
LB: loop body
LE: loop exit
PB: predicated region body
PF: predicated region fallthrough
CT: control target
= control target key end

     0   :  { %16 = vsyncpa [#allocation3], 0  ;;  %s1135_s0 = inlined_call_operand.hbm [shape: f32[8,20], index: 0, kind: input, shape index: {}]   ;;  %s1136_s1 = inlined_call_operand.hbm [shape: f32[8,20], index: 1, kind: input, shape index: {}]   ;;  %s1137_s2 = inlined_call_operand.hbm [shape: bf16[20,128], index: 2, kind: input, shape index: {}]   ;;  %s1138_s3 = inlined_call_operand.hbm [shape: bf16[20,128], index: 3, kind: input, shape index: {}]   ;;  %s1139_s4 = inlined_call_operand.vmem [shape: f32[1,128], index: 4, kind: input, shape index: {}]   ;;  %s1140_s5 = inlined_call_operand.hbm [shape: bf16[128,128], index: 5, kind: input, shape index: {}]   ;;  %s1141_s6 = inlined_call_operand.vmem [shape: f32[1,128], index: 6, kind: input, shape index: {}]   ;;  %s1142_s7 = inlined_call_operand.hbm [shape: bf16[128,128], index: 7, kind: input, shape index: {}]   ;;  %s1143_s8 = inlined_call_operand.vmem [shape: f32[1,128], index: 8, kind: input, shape index: {}]   ;;  %s1144_s9 = inlined_call_operand.hbm [shape: bf16[128,128], index: 9, kind: input, shape index: {}]   ;;  %s1145_s10 = inlined_call_operand.vmem [shape: f32[1,128], index: 10, kind: input, shape index: {}]   ;;  %s1146_s11 = inlined_call_operand.hbm [shape: f32[8,128], index: 11, kind: output, shape index: {}]  }
   0x1   :  { %17 = vsyncpa [#allocation6], 0 }
   0x2   :  { %18 = vsyncpa [#allocation9], 0 }
   0x3   :  { %19 = vsyncpa [#allocation12], 0 }
   0x4   :  { %20 = vsyncpa [#allocation4], 0  ;;  %s972_s17 = smov [#allocation5]  }
   0x5   :  { %s37_s18 = sshll.u32 %s972_s17, 4  ;;  %s38_s18 = int_to_ptr.vmem [resolvable:$true] %s37_s18 }
   0x6   :  { %s810_s19 = scalar_lea.vmem %s38_s18, 128  ;;  %p815_p1 = scmp.lt.s32.totalorder %s38_s18, %s38_s18 }
   0x7   :  { %p811_p0 = scmp.ne.s32.totalorder %s38_s18, %s810_s19  ;;  %p816_p2 = scmp.lt.s32.totalorder %s810_s19, %s810_s19 }
   0x9   :  { %p817_p3 = por %p816_p2, %p815_p1 }
   0xb   :  { %p818_p4 = pnand %p817_p3, %p811_p0 }
   0xd   :  { %821 = shalt.err (!%p818_p4)
}
   0xe   :  { %40 = dma.hbm_to_vmem [thread:$0]  %s1136_s1, 128, %s38_s18, [#allocation6]  }
   0xf   :  { %s973_s22 = smov [#allocation8]   ;;  %s974_s24 = smov [#allocation11]  }
  0x10   :  { %s58_s23 = sshll.u32 %s973_s22, 4  ;;  %s86_s25 = sshll.u32 %s974_s24, 4  ;;  %s59_s23 = int_to_ptr.vmem [resolvable:$true] %s58_s23  ;;  %s87_s25 = int_to_ptr.vmem [resolvable:$true] %s86_s25 }
  0x11   :  { %s830_s26 = scalar_lea.vmem %s59_s23, 192  ;;  %p835_p6 = scmp.lt.s32.totalorder %s59_s23, %s59_s23 }
  0x12   :  { %p831_p5 = scmp.ne.s32.totalorder %s59_s23, %s830_s26  ;;  %p836_p7 = scmp.lt.s32.totalorder %s830_s26, %s830_s26 }
  0x14   :  { %p837_p8 = por %p836_p7, %p835_p6 }
  0x16   :  { %p838_p9 = pnand %p837_p8, %p831_p5 }
  0x18   :  { %841 = shalt.err (!%p838_p9)
}
  0x19   :  { %s975_s27 = smov 64   ;;  %s976_s28 = smov 4  }
  0x1a   :  { %64 = dma.hbm_to_vmem [thread:$0]  %s1138_s3, 192, %s59_s23, [#allocation9], %s975_s27, %s975_s27, %s976_s28  }
  0x1b   :  { %s850_s1 = scalar_lea.vmem %s87_s25, 1024  ;;  %p855_p11 = scmp.lt.s32.totalorder %s87_s25, %s87_s25 }
  0x1c   :  { %p851_p10 = scmp.ne.s32.totalorder %s87_s25, %s850_s1  ;;  %p856_p12 = scmp.lt.s32.totalorder %s850_s1, %s850_s1 }
  0x1e   :  { %p857_p13 = por %p856_p12, %p855_p11 }
  0x20   :  { %p858_p0 = pnand %p857_p13, %p851_p10 }
  0x22   :  { %861 = shalt.err (!%p858_p0)
}
  0x23   :  { %92 = dma.hbm_to_vmem [thread:$0]  %s1142_s7, 1024, %s87_s25, [#allocation12], %s975_s27, %s975_s27, %s976_s28  }
  0x24   :  { %s977_s14 = smov [#allocation2]   ;;  %s978_s16 = smov [#allocation7]  }
  0x25   :  { %s27_s15 = sshll.u32 %s977_s14, 4  ;;  %s46_s3 = sshll.u32 %s978_s16, 4  ;;  %s28_s15 = int_to_ptr.vmem [resolvable:$true] %s27_s15  ;;  %s47_s3 = int_to_ptr.vmem [resolvable:$true] %s46_s3 }
  0x26   :  { %s870_s17 = scalar_lea.vmem %s28_s15, 128  ;;  %p875_p2 = scmp.lt.s32.totalorder %s28_s15, %s28_s15 }
  0x27   :  { %p871_p1 = scmp.ne.s32.totalorder %s28_s15, %s870_s17  ;;  %p876_p3 = scmp.lt.s32.totalorder %s870_s17, %s870_s17 }
  0x29   :  { %p877_p4 = por %p876_p3, %p875_p2 }
  0x2b   :  { %p878_p5 = pnand %p877_p4, %p871_p1 }
  0x2d   :  { %881 = shalt.err (!%p878_p5)
}
  0x2e   :  { %30 = dma.hbm_to_vmem [thread:$0]  %s1135_s0, 128, %s28_s15, [#allocation3]  }
  0x2f   :  { %s890_s20 = scalar_lea.vmem %s47_s3, 192  ;;  %p895_p7 = scmp.lt.s32.totalorder %s47_s3, %s47_s3 }
  0x30   :  { %p891_p6 = scmp.ne.s32.totalorder %s47_s3, %s890_s20  ;;  %p896_p8 = scmp.lt.s32.totalorder %s890_s20, %s890_s20 }
  0x32   :  { %p897_p9 = por %p896_p8, %p895_p7 }
  0x34   :  { %p898_p10 = pnand %p897_p9, %p891_p6 }
  0x36   :  { %901 = shalt.err (!%p898_p10)
}
  0x37   :  { %52 = dma.hbm_to_vmem [thread:$0]  %s1137_s2, 192, %s47_s3, [#allocation6], %s975_s27, %s975_s27, %s976_s28  }
  0x38   :  { %s979_s22 = smov [#allocation10]   ;;  %s980_s24 = smov [#allocation13]  }
  0x39   :  { %s72_s23 = sshll.u32 %s979_s22, 4  ;;  %s100_s0 = sshll.u32 %s980_s24, 4  ;;  %s73_s23 = int_to_ptr.vmem [resolvable:$true] %s72_s23  ;;  %s101_s0 = int_to_ptr.vmem [resolvable:$true] %s100_s0 }
  0x3a   :  { %s910_s25 = scalar_lea.vmem %s73_s23, 1024  ;;  %p915_p12 = scmp.lt.s32.totalorder %s73_s23, %s73_s23 }
  0x3b   :  { %p911_p11 = scmp.ne.s32.totalorder %s73_s23, %s910_s25  ;;  %p916_p13 = scmp.lt.s32.totalorder %s910_s25, %s910_s25 }
  0x3d   :  { %p917_p0 = por %p916_p13, %p915_p12 }
  0x3f   :  { %p918_p1 = pnand %p917_p0, %p911_p11 }
  0x41   :  { %921 = shalt.err (!%p918_p1)
}
  0x42   :  { %78 = dma.hbm_to_vmem [thread:$0]  %s1140_s5, 1024, %s73_s23, [#allocation9], %s975_s27, %s975_s27, %s976_s28  }
  0x43   :  { %s930_s2 = scalar_lea.vmem %s101_s0, 1024  ;;  %p935_p3 = scmp.lt.s32.totalorder %s101_s0, %s101_s0 }
  0x44   :  { %p931_p2 = scmp.ne.s32.totalorder %s101_s0, %s930_s2  ;;  %p936_p4 = scmp.lt.s32.totalorder %s930_s2, %s930_s2 }
  0x46   :  { %p937_p5 = por %p936_p4, %p935_p3 }
  0x48   :  { %p938_p6 = pnand %p937_p5, %p931_p2 }
  0x4a   :  { %941 = shalt.err (!%p938_p6)
}
  0x4b   :  { %106 = dma.hbm_to_vmem [thread:$0]  %s1144_s9, 1024, %s101_s0, [#allocation12], %s975_s27, %s975_s27, %s976_s28  }
  0x4c   :  { %962 = dma.done.wait [#allocation3], 128  }
  0x4d   :  { %963 = vsyncadd [#allocation3], 4294967168 }
  0x4e   :  { %964 = dma.done.wait [#allocation6], 320  }
  0x4f   :  { %965 = vsyncadd [#allocation6], 4294966976 }
  0x50   :  { %966 = dma.done.wait [#allocation9], 1216  }
  0x51   :  { %967 = vsyncadd [#allocation9], 4294966080 }
  0x52   :  { %968 = dma.done.wait [#allocation12], 2048  }
  0x53   :  { %969 = vsyncadd [#allocation12], 4294965248  ;;  %v981_v0 = vmov 0.0   ;;  %vm982_vm0 = vmmov 0   ;;  %vm154_vm1 = vcmask 1041408   ;;  %v776_v4 = vld [vmem:[#allocation8] sm:$0xff]  }
  0x54   :  { %686 = vmatprep.subr.bf16.mxu1 %v981_v0  ;;  %690 = vmatprep.mubr.msk.bf16.mxu1 %vm982_vm0, %v981_v0  ;;  %v774_v1 = vld [vmem:[#allocation8 + $0x8] ss:$0 sps:$4 sm:$0x33]   ;;  %v775_v2 = vld [vmem:[#allocation7 + $0x8] ss:$0 sps:$4 sm:$0x33]  }
  0x55   :  { %702 = vmatprep.subr.bf16.mxu0 %v981_v0  ;;  %718 = vmatprep.mubr.msk.bf16.mxu0 %vm982_vm0, %v981_v0  ;;  %v156_v3 = vsel %vm154_vm1, %v774_v1, 0  ;;  %v133_v5 = vld [vmem:[#allocation5] sm:$0xff]  ;;  %v778_v6 = vld [vmem:[#allocation10 + $0x38] sm:$0xff]   ;;  %v779_v8 = vld [vmem:[#allocation10 + $0x30] sm:$0xff]   ;;  %v211_v9 = vsel %vm154_vm1, %v775_v2, 0  ;;  %vm150_vm2 = vcmask 162816  }
  0x56   :  { %687 = vmatpush3.bf16.msra.mxu1 %v156_v3  ;;  %v134_v7 = vpack.c.bf16 %v133_v5, %v133_v5  ;;  %703 = vmatpush3.bf16.msra.mxu0 %v778_v6  ;;  %v780_v10 = vld [vmem:[#allocation10 + $0x28] sm:$0xff]   ;;  %v131_v12 = vld [vmem:[#allocation2] sm:$0xff]  ;;  %v781_v13 = vld [vmem:[#allocation10 + $0x20] sm:$0xff]   ;;  %s983_s14 = smov [#allocation14]  }
  0x57   :  { %688 = vmatprep.subr.bf16.mxu1 %v981_v0  ;;  %704 = vmatprep.subr.bf16.mxu0 %v981_v0  ;;  %v777_v11 = vld [vmem:[#allocation7] sm:$0xff]   ;;  %v132_v14 = vpack.c.bf16 %v131_v12, %v131_v12  ;;  %v782_v15 = vld [vmem:[#allocation10 + $0x18] sm:$0xff]   ;;  %v783_v16 = vld [vmem:[#allocation10 + $0x10] sm:$0xff]   ;;  %s607_s15 = sshll.u32 %s983_s14, 4  ;;  %s608_s15 = int_to_ptr.vmem [resolvable:$true] %s607_s15 }
  0x58   :  { %v784_v17 = vld [vmem:[#allocation10 + $0x8] sm:$0xff]   ;;  %v785_v18 = vld [vmem:[#allocation10] sm:$0xff]   ;;  %v786_v19 = vld [vmem:[#allocation11 + $0x38] sm:$0xff]   ;;  %p947_p8 = scmp.lt.s32.totalorder %s608_s15, %s608_s15 }
  0x59   :  { %v787_v20 = vld [vmem:[#allocation11 + $0x30] sm:$0xff]   ;;  %v788_v21 = vld [vmem:[#allocation11 + $0x28] sm:$0xff]   ;;  %v789_v22 = vld [vmem:[#allocation11 + $0x20] sm:$0xff]  }
  0x5a   :  { %689 = vmatpush3.bf16.msra.mxu1 %v776_v4  ;;  %705 = vmatpush3.bf16.msra.mxu0 %v779_v8  ;;  %v790_v23 = vld [vmem:[#allocation11 + $0x18] sm:$0xff]   ;;  %v791_v24 = vld [vmem:[#allocation11 + $0x10] sm:$0xff]   ;;  %v792_v38 = vld [vmem:[#allocation11 + $0x8] sm:$0xff]  }
  0x5b   :  { %694 = vmatprep.subr.bf16.mxu1 %v981_v0  ;;  %706 = vmatprep.subr.bf16.mxu0 %v981_v0  ;;  %v625_v30 = vld [vmem:[%s1139_s4] ss:$0 sm:$0xff]  ;;  %v793_v39 = vld [vmem:[#allocation11] sm:$0xff]   ;;  %v795_v41 = vld [vmem:[#allocation13 + $0x30] sm:$0xff]  }
  0x5c   :  { %v794_v40 = vld [vmem:[#allocation13 + $0x38] sm:$0xff]   ;;  %v796_v42 = vld [vmem:[#allocation13 + $0x28] sm:$0xff]   ;;  %v797_v43 = vld [vmem:[#allocation13 + $0x20] sm:$0xff]  }
  0x5d   :  { %691 = vmatmul.mubr.msk.bf16.vlgmr.msra.gmra.mxu1 %vm150_vm2, %v134_v7  ;;  %v798_v44 = vld [vmem:[#allocation13 + $0x18] sm:$0xff]   ;;  %v799_v45 = vld [vmem:[#allocation13 + $0x10] sm:$0xff]   ;;  %v800_v54 = vld [vmem:[#allocation13 + $0x8] sm:$0xff]  }
  0x5e   :  { %695 = vmatpush3.bf16.msra.mxu1 %v211_v9  ;;  %698 = vmatprep.mubr.msk.bf16.mxu1 %vm982_vm0, %v981_v0  ;;  %v626_v46 = vld [vmem:[%s1141_s6] ss:$0 sm:$0xff]  ;;  %v801_v55 = vld [vmem:[#allocation13] sm:$0xff]  }
  0x5f   :  { %696 = vmatprep.subr.bf16.mxu1 %v981_v0  ;;  %707 = vmatpush3.bf16.msra.mxu0 %v780_v10  ;;  %v635_v56 = vld [vmem:[%s1143_s8] ss:$0 sm:$0xff]  ;;  %s942_s8 = scalar_lea.vmem %s608_s15, 128 }
  0x60   :  { %708 = vmatprep.subr.bf16.mxu0 %v981_v0  ;;  %v644_v1 = vld [vmem:[%s1145_s10] ss:$0 sm:$0xff]  ;;  %p943_p7 = scmp.ne.s32.totalorder %s608_s15, %s942_s8  ;;  %p948_p9 = scmp.lt.s32.totalorder %s942_s8, %s942_s8 }
  0x62   :  { %697 = vmatpush3.bf16.msra.mxu1 %v777_v11  ;;  %p949_p10 = por %p948_p9, %p947_p8 }
  0x63   :  { %722 = vmatprep.subr.bf16.mxu1 %v981_v0  ;;  %709 = vmatpush3.bf16.msra.mxu0 %v781_v13 }
  0x64   :  { %710 = vmatprep.subr.bf16.mxu0 %v981_v0  ;;  %p950_p11 = pnand %p949_p10, %p943_p7 }
  0x65   :  { %699 = vmatmul.mubr.msk.bf16.vlgmr.msra.gmra.mxu1 %vm150_vm2, %v132_v14 }
  0x66   :  { %738 = vmatprep.mubr.msk.bf16.mxu1 %vm982_vm0, %v981_v0  ;;  %723 = vmatpush3.bf16.msra.mxu1 %v786_v19 }
  0x67   :  { %711 = vmatpush3.bf16.msra.mxu0 %v782_v15  ;;  %724 = vmatprep.subr.bf16.mxu1 %v981_v0 }
  0x68   :  { %712 = vmatprep.subr.bf16.mxu0 %v981_v0 }
  0x6a   :  { %725 = vmatpush3.bf16.msra.mxu1 %v787_v20 }
  0x6b   :  { %713 = vmatpush3.bf16.msra.mxu0 %v783_v16  ;;  %726 = vmatprep.subr.bf16.mxu1 %v981_v0 }
  0x6c   :  { %714 = vmatprep.subr.bf16.mxu0 %v981_v0 }
  0x6e   :  { %727 = vmatpush3.bf16.msra.mxu1 %v788_v21 }
  0x6f   :  { %715 = vmatpush3.bf16.msra.mxu0 %v784_v17  ;;  %728 = vmatprep.subr.bf16.mxu1 %v981_v0 }
  0x70   :  { %716 = vmatprep.subr.bf16.mxu0 %v981_v0 }
  0x72   :  { %729 = vmatpush3.bf16.msra.mxu1 %v789_v22 }
  0x73   :  { %717 = vmatpush3.bf16.msra.mxu0 %v785_v18  ;;  %730 = vmatprep.subr.bf16.mxu1 %v981_v0 }
  0x74   :  { %742 = vmatprep.subr.bf16.mxu0 %v981_v0 }
  0x76   :  { %731 = vmatpush3.bf16.msra.mxu1 %v790_v23 }
  0x77   :  { %732 = vmatprep.subr.bf16.mxu1 %v981_v0 }
  0x7a   :  { %733 = vmatpush3.bf16.msra.mxu1 %v791_v24 }
  0x7b   :  { %734 = vmatprep.subr.bf16.mxu1 %v981_v0 }
  0x7e   :  { %735 = vmatpush3.bf16.msra.mxu1 %v792_v38 }
  0x7f   :  { %736 = vmatprep.subr.bf16.mxu1 %v981_v0 }
  0x82   :  { %737 = vmatpush3.bf16.msra.mxu1 %v793_v39 }
 0x11d   :  { %v192_v25 = vpop.f32.mrf.mxu1 }
 0x11f   :  { %v692_v26 = vpop.f32.mrf.mxu1 }
 0x121   :  { %v195_v27 = vpop.f32.mrf.mxu1 }
 0x123   :  { %v693_v28 = vpop.f32.mrf.mxu1 }
 0x125   :  { %v247_v29 = vpop.f32.mrf.mxu1 }
 0x126   :  { %v248_v31 = vadd.f32 %v247_v29, %v192_v25 }
 0x127   :  { %v700_v32 = vpop.f32.mrf.mxu1 }
 0x128   :  { %v260_v33 = vadd.f32 %v625_v30, %v248_v31 }
 0x129   :  { %v250_v34 = vpop.f32.mrf.mxu1 }
 0x12a   :  { %v261_v35 = vmax.f32 %v260_v33, 0.0 }
 0x12b   :  { %v701_v36 = vpop.f32.mrf.mxu1 }
 0x12c   :  { %v262_v37 = vpack.c.bf16 %v261_v35, %v261_v35 }
 0x12e   :  { %719 = vmatmul.mubr.bf16.vlgmr.msra.gmra.mxu0 %v262_v37 }
 0x12f   :  { %758 = vmatprep.mubr.msk.bf16.mxu0 %vm982_vm0, %v981_v0  ;;  %743 = vmatpush3.bf16.msra.mxu0 %v794_v40 }
 0x130   :  { %744 = vmatprep.subr.bf16.mxu0 %v981_v0 }
 0x133   :  { %745 = vmatpush3.bf16.msra.mxu0 %v795_v41 }
 0x134   :  { %746 = vmatprep.subr.bf16.mxu0 %v981_v0 }
 0x137   :  { %747 = vmatpush3.bf16.msra.mxu0 %v796_v42 }
 0x138   :  { %748 = vmatprep.subr.bf16.mxu0 %v981_v0 }
 0x13b   :  { %749 = vmatpush3.bf16.msra.mxu0 %v797_v43 }
 0x13c   :  { %750 = vmatprep.subr.bf16.mxu0 %v981_v0 }
 0x13f   :  { %751 = vmatpush3.bf16.msra.mxu0 %v798_v44 }
 0x140   :  { %752 = vmatprep.subr.bf16.mxu0 %v981_v0 }
 0x143   :  { %753 = vmatpush3.bf16.msra.mxu0 %v799_v45 }
 0x144   :  { %754 = vmatprep.subr.bf16.mxu0 %v981_v0 }
 0x147   :  { %755 = vmatpush3.bf16.msra.mxu0 %v800_v54 }
 0x148   :  { %756 = vmatprep.subr.bf16.mxu0 %v981_v0 }
 0x14b   :  { %757 = vmatpush3.bf16.msra.mxu0 %v801_v55 }
 0x1ee   :  { %v368_v47 = vpop.f32.mrf.mxu0 }
 0x1ef   :  { %v369_v48 = vadd.f32 %v626_v46, %v368_v47 }
 0x1f0   :  { %v720_v49 = vpop.f32.mrf.mxu0 }
 0x1f1   :  { %v374_v50 = vmax.f32 %v369_v48, 0.0 }
 0x1f2   :  { %v371_v51 = vpop.f32.mrf.mxu0 }
 0x1f3   :  { %v375_v52 = vpack.c.bf16 %v374_v50, %v374_v50 }
 0x1f4   :  { %v721_v53 = vpop.f32.mrf.mxu0 }
 0x1f5   :  { %739 = vmatmul.mubr.bf16.vlgmr.msra.gmra.mxu1 %v375_v52 }
 0x2b5   :  { %v481_v57 = vpop.f32.mrf.mxu1 }
 0x2b6   :  { %v482_v58 = vadd.f32 %v635_v56, %v481_v57 }
 0x2b7   :  { %v740_v59 = vpop.f32.mrf.mxu1 }
 0x2b8   :  { %v487_v60 = vmax.f32 %v482_v58, 0.0 }
 0x2b9   :  { %v484_v61 = vpop.f32.mrf.mxu1 }
 0x2ba   :  { %v488_v62 = vpack.c.bf16 %v487_v60, %v487_v60 }
 0x2bb   :  { %v741_v63 = vpop.f32.mrf.mxu1 }
 0x2bc   :  { %759 = vmatmul.mubr.bf16.vlgmr.msra.gmra.mxu0 %v488_v62 }
 0x37c   :  { %v594_v0 = vpop.f32.mrf.mxu0 }
 0x37d   :  { %v595_v2 = vadd.f32 %v644_v1, %v594_v0 }
 0x37e   :  { %v760_v3 = vpop.f32.mrf.mxu0 }
 0x37f   :  { %600 = vst [vmem:[#allocation14] sm:$0xff] %v595_v2 }
 0x380   :  { %v597_v4 = vpop.f32.mrf.mxu0 }
 0x381   :  { %953 = shalt.err (!%p950_p11)
}
 0x382   :  { %610 = dma.vmem_to_hbm [thread:$0]  %s608_s15, 128, %s1146_s11, [#allocation4]   ;;  %v761_v5 = vpop.f32.mrf.mxu0 }
 0x383   :  { %970 = dma.done.wait [#allocation4], 128  }
 0x384   :  { %971 = vsyncadd [#allocation4], 4294967168 }
 0x385   :  { %614 = vsyncpa [#allocation3], 1 }
 0x386   :  { %615 = vsyncpa [#allocation6], 1 }
 0x387   :  { %616 = vsyncpa [#allocation9], 1 }
 0x388   :  { %617 = vsyncpa [#allocation12], 1 }
 0x389   :  { %618 = vsyncpa [#allocation4], 1 }

</bundles_post_ra>
